<compile_context>
chip_gen: v7x
topology: tpu7x:2x2x1
jax: 0.10.0
libtpu: 0.0.40
codegen_flags: <defaults>
</compile_context>

<pallas_src>
import math
import functools

import jax
import jax.numpy as jnp
from jax.experimental import pallas as pl
from jax.experimental.pallas import tpu as pltpu

_HALF_LOG_2PI = 0.9189385332046727
_PSI_ONE = -0.5772156649015329          # digamma(1)


def _round_up(x, m):
    return ((x + m - 1) // m) * m


def _fast_rcp(x):
    """EUP approx reciprocal + one Newton step (~f32 accuracy, 1 EUP op)."""
    r = pl.reciprocal(x, approx=True)
    return r * (2.0 - x * r)


def _digamma_lgamma(x):
    """Fused digamma(x) and lgamma(x) for f32 x > 0.

    Shift-by-8 recurrence + Stirling series.  The recurrences are built from
    two 4-term products (shared between psi and lgamma) so the per-element
    EUP cost is 3 logs + 3 approx reciprocals; everything else is VPU.
    The 4-term split keeps products < ~x^4 (no f32 overflow up to x ~ 4e9).
    """
    x1, x2, x3 = x + 1.0, x + 2.0, x + 3.0
    x4, x5, x6, x7 = x + 4.0, x + 5.0, x + 6.0, x + 7.0
    z = x + 8.0

    d01 = x * x1
    d23 = x2 * x3
    d45 = x4 * x5
    d67 = x6 * x7
    dA = d01 * d23                      # prod_{i=0..3}(x+i)
    dB = d45 * d67                      # prod_{i=4..7}(x+i)

    # sum_{i=0..3} 1/(x+i) = nA/dA ;  sum_{i=4..7} 1/(x+i) = nB/dB
    nA = (2.0 * x + 1.0) * d23 + (2.0 * x + 5.0) * d01
    nB = (2.0 * x + 9.0) * d67 + (2.0 * x + 13.0) * d45

    recur_psi = nA * _fast_rcp(dA) + nB * _fast_rcp(dB)   # sum 1/(x+i)
    recur_lg = jnp.log(dA) + jnp.log(dB)                  # sum log(x+i)

    inv = _fast_rcp(z)
    inv2 = inv * inv
    log_z = jnp.log(z)

    psi_tail = inv2 * (1.0 / 12.0 - inv2 * (1.0 / 120.0
               - inv2 * (1.0 / 252.0 - inv2 * (1.0 / 240.0))))
    psi = log_z - 0.5 * inv - psi_tail - recur_psi

    lg_tail = inv * (1.0 / 12.0 - inv2 * (1.0 / 360.0 - inv2 * (1.0 / 1260.0)))
    lg = (z - 0.5) * log_z - z + _HALF_LOG_2PI + lg_tail - recur_lg

    return psi, lg


# ------------------------------ Pallas kernel ------------------------------

def _edl_ce_kernel(alpha_ref, y_ref, loss_ref, kld_ref, loss_acc, kld_acc, *,
                   lgamma_k, one_hot_y):
    n_i = pl.program_id(1)
    t_i = pl.program_id(2)

    @pl.when(jnp.logical_and(n_i == 0, t_i == 0))
    def _init():
        loss_acc[...] = jnp.zeros_like(loss_acc)
        kld_acc[...] = jnp.zeros_like(kld_acc)

    alpha = alpha_ref[...].astype(jnp.float32)              # (K, TP)
    y = y_ref[...].astype(jnp.float32)                      # (K, TP)
    K = alpha.shape[0]

    S = jnp.sum(alpha, axis=0, keepdims=True)               # (1, TP)
    ah = y + (1.0 - y) * alpha                               # (K, TP)
    Sh = jnp.sum(ah, axis=0, keepdims=True)                  # (1, TP)

    if one_hot_y:
        # Exact for hard one-hot y: ah == 1 on the gt class, == alpha elsewhere,
        # so digamma/lgamma(ah) reuse the alpha results.
        stack = jnp.concatenate([alpha, S, Sh], axis=0)      # (K+2, TP)
        psi, lg = _digamma_lgamma(stack)
        psi_a, lg_a = psi[:K], lg[:K]
        psi_S = psi[K:K + 1]
        psi_Sh, lg_Sh = psi[K + 1:K + 2], lg[K + 1:K + 2]
        is_gt = y >= 0.5
        psi_ah = jnp.where(is_gt, _PSI_ONE, psi_a)           # digamma(1)
        lg_ah = jnp.where(is_gt, 0.0, lg_a)                  # lgamma(1) = 0
    else:
        stack = jnp.concatenate([alpha, ah, S, Sh], axis=0)  # (2K+2, TP)
        psi, lg = _digamma_lgamma(stack)
        psi_a = psi[:K]
        psi_ah, lg_ah = psi[K:2 * K], lg[K:2 * K]
        psi_S = psi[2 * K:2 * K + 1]
        psi_Sh, lg_Sh = psi[2 * K + 1:2 * K + 2], lg[2 * K + 1:2 * K + 2]

    # ---- 'ce' evidential loss + KL(Dir(ah)||Dir(1)), per-lane partial sums ----
    loss_row = jnp.sum(y * (psi_S - psi_a), axis=0, keepdims=True)       # (1, TP)
    kld_row = (lg_Sh - lgamma_k
               - jnp.sum(lg_ah, axis=0, keepdims=True)
               + jnp.sum((ah - 1.0) * (psi_ah - psi_Sh), axis=0, keepdims=True))

    loss_acc[...] += loss_row
    kld_acc[...] += kld_row

    @pl.when(jnp.logical_and(n_i == pl.num_programs(1) - 1,
                             t_i == pl.num_programs(2) - 1))
    def _fin():
        # Single cross-lane reduce per core-split; lane-dense (1,1,128) store.
        loss_ref[...] = jnp.broadcast_to(jnp.sum(loss_acc[...]), loss_ref.shape)
        kld_ref[...] = jnp.broadcast_to(jnp.sum(kld_acc[...]), kld_ref.shape)


# ------------------------------ host wrapper -------------------------------

def edl_criterion_ce(alpha_nchw, y_nchw, *, tile_p_max=4096, core_splits=2,
                     one_hot_y=False):
    """EDL_Criterion(loss_fn='ce').forward(alpha, y) -> (loss, kld) scalars."""
    N, K, H, W = alpha_nchw.shape
    assert y_nchw.shape == alpha_nchw.shape
    HW = H * W
    P = N * HW
    C = int(core_splits)

    # Lane tile: large (amortizes ~0.35us/step pipeline overhead) but no
    # bigger than one padded image so tiny inputs stay tiny.
    tile_p = min(int(tile_p_max), _round_up(HW, 128))
    HWp = _round_up(HW, C * tile_p)
    T = HWp // (C * tile_p)          # lane tiles per (image, core-split)

    # NCHW -> (N, K, H*W) is a pure reshape (no extra HBM transpose pass).
    if alpha_nchw.dtype not in (jnp.float32, jnp.bfloat16):
        alpha_nchw = alpha_nchw.astype(jnp.float32)
    if y_nchw.dtype not in (jnp.float32, jnp.bfloat16):
        y_nchw = y_nchw.astype(jnp.float32)
    a3 = alpha_nchw.reshape(N, K, HW)
    y3 = y_nchw.reshape(N, K, HW)

    if HWp != HW:
        # Pad lanes with (alpha=1, y=0): such lanes contribute exactly zero to
        # both the loss and the KLD sums, so no masking is needed.
        pad = HWp - HW
        a3 = jnp.pad(a3, ((0, 0), (0, 0), (0, pad)), constant_values=1.0)
        y3 = jnp.pad(y3, ((0, 0), (0, 0), (0, pad)), constant_values=0.0)

    kernel = functools.partial(_edl_ce_kernel,
                               lgamma_k=float(math.lgamma(K)),
                               one_hot_y=bool(one_hot_y))

    in_spec = pl.BlockSpec((pl.Squeezed(), K, tile_p),
                           lambda c, n, t: (n, 0, c * T + t))
    out_spec = pl.BlockSpec((1, 1, 128), lambda c, n, t: (c, 0, 0))

    loss_p, kld_p = pl.pallas_call(
        kernel,
        out_shape=(jax.ShapeDtypeStruct((C, 1, 128), jnp.float32),
                   jax.ShapeDtypeStruct((C, 1, 128), jnp.float32)),
        grid_spec=pltpu.PrefetchScalarGridSpec(
            num_scalar_prefetch=0,
            grid=(C, N, T),
            in_specs=[in_spec, in_spec],
            out_specs=(out_spec, out_spec),
            scratch_shapes=[pltpu.VMEM((1, tile_p), jnp.float32),
                            pltpu.VMEM((1, tile_p), jnp.float32)]),
        compiler_params=pltpu.CompilerParams(
            dimension_semantics=("parallel", "arbitrary", "arbitrary")),
    )(a3, y3)

    inv_n = 1.0 / float(P)           # .mean() over the real (unpadded) pixels
    loss = jnp.sum(loss_p[:, 0, 0]) * inv_n
    kld = jnp.sum(kld_p[:, 0, 0]) * inv_n
    return loss, kld


# ---------------------------------- main ------------------------------------

if __name__ == "__main__":
    key = jax.random.PRNGKey(0)
    k1, k2 = jax.random.split(key)

    N, K, H, W = 2, 4, 16, 16
    # Dirichlet parameters alpha = evidence + 1 (strictly positive).
    evidence = jax.nn.softplus(jax.random.normal(k1, (N, K, H, W), dtype=jnp.float32))
    alpha = evidence + 1.0
    # One-hot segmentation targets in NCHW.
    labels = jax.random.randint(k2, (N, H, W), 0, K)
    y = jnp.transpose(jax.nn.one_hot(labels, K, dtype=jnp.float32), (0, 3, 1, 2))

    # Run both the one-hot fast path and the generic (soft-label) path.
    loss_oh, kld_oh = jax.block_until_ready(edl_criterion_ce(alpha, y, one_hot_y=True))
    loss_gn, kld_gn = jax.block_until_ready(edl_criterion_ce(alpha, y, one_hot_y=False))

    # Pure-JAX reference (outside the kernel) for a sanity check.
    from jax.scipy.special import digamma as jdg, gammaln as jlg
    S = jnp.sum(alpha, axis=1, keepdims=True)
    ref_loss = jnp.mean(jnp.sum(y * (jdg(S) - jdg(alpha)), axis=1))
    ah = y + (1.0 - y) * alpha
    Sh = jnp.sum(ah, axis=1)
    ref_kld = jnp.mean(jlg(Sh) - jlg(jnp.float32(K)) - jnp.sum(jlg(ah), axis=1)
                       + jnp.sum((ah - 1.0) * (jdg(ah) - jdg(Sh[:, None, :, :])), axis=1))

    for name, got, want in [("loss/one-hot", loss_oh, ref_loss),
                            ("kld/one-hot", kld_oh, ref_kld),
                            ("loss/generic", loss_gn, ref_loss),
                            ("kld/generic", kld_gn, ref_kld)]:
        assert jnp.allclose(got, want, atol=2e-3, rtol=2e-3), (name, got, want)

    print("KERNEL_OK")
</pallas_src>

<mosaic_0001>
module attributes {stable_mosaic.version = 11 : i64} {
  func.func @_edl_ce_kernel(%arg0: i32, %arg1: i32, %arg2: i32, %arg3: memref<1x4x256xf32, #tpu.memory_space<vmem>>, %arg4: memref<1x4x256xf32, #tpu.memory_space<vmem>>, %arg5: memref<1x1x128xf32, #tpu.memory_space<vmem>>, %arg6: memref<1x1x128xf32, #tpu.memory_space<vmem>>, %arg7: memref<1x256xf32, #tpu.memory_space<vmem>>, %arg8: memref<1x256xf32, #tpu.memory_space<vmem>>) attributes {dimension_semantics = [#tpu.dimension_semantics<parallel>, #tpu.dimension_semantics<arbitrary>, #tpu.dimension_semantics<arbitrary>], iteration_bounds = array<i64: 2, 2, 1>, scalar_prefetch = 0 : i64, scratch_operands = 2 : i64, tpu.core_type = #tpu.core_type<tc>, window_params = [{transform_indices = @transform_0, window_bounds = array<i64: 1, 4, 256>}, {transform_indices = @transform_1, window_bounds = array<i64: 1, 4, 256>}, {transform_indices = @transform_2, window_bounds = array<i64: 1, 1, 128>}, {transform_indices = @transform_3, window_bounds = array<i64: 1, 1, 128>}]} {
    %c0_i32 = arith.constant 0 : i32
    %0 = arith.cmpi eq, %arg1, %c0_i32 : i32
    %c0_i32_0 = arith.constant 0 : i32
    %1 = arith.cmpi eq, %arg2, %c0_i32_0 : i32
    %2 = arith.andi %0, %1 : i1
    %3 = arith.extui %2 : i1 to i32
    %c0_i32_1 = arith.constant 0 : i32
    %4 = arith.cmpi ne, %3, %c0_i32_1 : i32
    scf.if %4 {
      %cst_56 = arith.constant 0.000000e+00 : f32
      %157 = vector.broadcast %cst_56 : f32 to vector<1x256xf32>
      %c0_57 = arith.constant 0 : index
      %c0_58 = arith.constant 0 : index
      %158 = vector.load %arg7[%c0_57, %c0_58] : memref<1x256xf32, #tpu.memory_space<vmem>>, vector<1x256xf32>
      tpu.vector_store %arg7[%c0_57, %c0_58], %157 {strides = array<i32>} : memref<1x256xf32, #tpu.memory_space<vmem>>, vector<1x256xf32>,
      %cst_59 = arith.constant 0.000000e+00 : f32
      %159 = vector.broadcast %cst_59 : f32 to vector<1x256xf32>
      %c0_60 = arith.constant 0 : index
      %c0_61 = arith.constant 0 : index
      %160 = vector.load %arg8[%c0_60, %c0_61] : memref<1x256xf32, #tpu.memory_space<vmem>>, vector<1x256xf32>
      tpu.vector_store %arg8[%c0_60, %c0_61], %159 {strides = array<i32>} : memref<1x256xf32, #tpu.memory_space<vmem>>, vector<1x256xf32>,
    } else {
    }
    %c0 = arith.constant 0 : index
    %c0_2 = arith.constant 0 : index
    %c0_3 = arith.constant 0 : index
    %5 = vector.load %arg3[%c0, %c0_2, %c0_3] : memref<1x4x256xf32, #tpu.memory_space<vmem>>, vector<1x4x256xf32>
    %6 = vector.shape_cast %5 : vector<1x4x256xf32> to vector<4x256xf32>
    %c0_4 = arith.constant 0 : index
    %c0_5 = arith.constant 0 : index
    %c0_6 = arith.constant 0 : index
    %7 = vector.load %arg4[%c0_4, %c0_5, %c0_6] : memref<1x4x256xf32, #tpu.memory_space<vmem>>, vector<1x4x256xf32>
    %8 = vector.shape_cast %7 : vector<1x4x256xf32> to vector<4x256xf32>
    %cst = arith.constant dense<0.000000e+00> : vector<256xf32>
    %9 = vector.multi_reduction <add>, %6, %cst [0] : vector<4x256xf32> to vector<256xf32>
    %10 = vector.shape_cast %9 : vector<256xf32> to vector<1x256xf32>
    %cst_7 = arith.constant 1.000000e+00 : f32
    %11 = vector.broadcast %cst_7 : f32 to vector<4x256xf32>
    %12 = arith.subf %11, %8 : vector<4x256xf32>
    %13 = arith.mulf %12, %6 : vector<4x256xf32>
    %14 = arith.addf %8, %13 : vector<4x256xf32>
    %cst_8 = arith.constant dense<0.000000e+00> : vector<256xf32>
    %15 = vector.multi_reduction <add>, %14, %cst_8 [0] : vector<4x256xf32> to vector<256xf32>
    %16 = vector.shape_cast %15 : vector<256xf32> to vector<1x256xf32>
    %17 = tpu.concatenate %6, %10, %16 in 0 : vector<4x256xf32>, vector<1x256xf32>, vector<1x256xf32> -> vector<6x256xf32>
    %cst_9 = arith.constant 1.000000e+00 : f32
    %18 = vector.broadcast %cst_9 : f32 to vector<6x256xf32>
    %19 = arith.addf %17, %18 : vector<6x256xf32>
    %cst_10 = arith.constant 2.000000e+00 : f32
    %20 = vector.broadcast %cst_10 : f32 to vector<6x256xf32>
    %21 = arith.addf %17, %20 : vector<6x256xf32>
    %cst_11 = arith.constant 3.000000e+00 : f32
    %22 = vector.broadcast %cst_11 : f32 to vector<6x256xf32>
    %23 = arith.addf %17, %22 : vector<6x256xf32>
    %cst_12 = arith.constant 4.000000e+00 : f32
    %24 = vector.broadcast %cst_12 : f32 to vector<6x256xf32>
    %25 = arith.addf %17, %24 : vector<6x256xf32>
    %cst_13 = arith.constant 5.000000e+00 : f32
    %26 = vector.broadcast %cst_13 : f32 to vector<6x256xf32>
    %27 = arith.addf %17, %26 : vector<6x256xf32>
    %cst_14 = arith.constant 6.000000e+00 : f32
    %28 = vector.broadcast %cst_14 : f32 to vector<6x256xf32>
    %29 = arith.addf %17, %28 : vector<6x256xf32>
    %cst_15 = arith.constant 7.000000e+00 : f32
    %30 = vector.broadcast %cst_15 : f32 to vector<6x256xf32>
    %31 = arith.addf %17, %30 : vector<6x256xf32>
    %cst_16 = arith.constant 8.000000e+00 : f32
    %32 = vector.broadcast %cst_16 : f32 to vector<6x256xf32>
    %33 = arith.addf %17, %32 : vector<6x256xf32>
    %34 = arith.mulf %17, %19 : vector<6x256xf32>
    %35 = arith.mulf %21, %23 : vector<6x256xf32>
    %36 = arith.mulf %25, %27 : vector<6x256xf32>
    %37 = arith.mulf %29, %31 : vector<6x256xf32>
    %38 = arith.mulf %34, %35 : vector<6x256xf32>
    %39 = arith.mulf %36, %37 : vector<6x256xf32>
    %cst_17 = arith.constant 2.000000e+00 : f32
    %40 = vector.broadcast %cst_17 : f32 to vector<6x256xf32>
    %41 = arith.mulf %40, %17 : vector<6x256xf32>
    %cst_18 = arith.constant 1.000000e+00 : f32
    %42 = vector.broadcast %cst_18 : f32 to vector<6x256xf32>
    %43 = arith.addf %41, %42 : vector<6x256xf32>
    %44 = arith.mulf %43, %35 : vector<6x256xf32>
    %cst_19 = arith.constant 2.000000e+00 : f32
    %45 = vector.broadcast %cst_19 : f32 to vector<6x256xf32>
    %46 = arith.mulf %45, %17 : vector<6x256xf32>
    %cst_20 = arith.constant 5.000000e+00 : f32
    %47 = vector.broadcast %cst_20 : f32 to vector<6x256xf32>
    %48 = arith.addf %46, %47 : vector<6x256xf32>
    %49 = arith.mulf %48, %34 : vector<6x256xf32>
    %50 = arith.addf %44, %49 : vector<6x256xf32>
    %cst_21 = arith.constant 2.000000e+00 : f32
    %51 = vector.broadcast %cst_21 : f32 to vector<6x256xf32>
    %52 = arith.mulf %51, %17 : vector<6x256xf32>
    %cst_22 = arith.constant 9.000000e+00 : f32
    %53 = vector.broadcast %cst_22 : f32 to vector<6x256xf32>
    %54 = arith.addf %52, %53 : vector<6x256xf32>
    %55 = arith.mulf %54, %37 : vector<6x256xf32>
    %cst_23 = arith.constant 2.000000e+00 : f32
    %56 = vector.broadcast %cst_23 : f32 to vector<6x256xf32>
    %57 = arith.mulf %56, %17 : vector<6x256xf32>
    %cst_24 = arith.constant 1.300000e+01 : f32
    %58 = vector.broadcast %cst_24 : f32 to vector<6x256xf32>
    %59 = arith.addf %57, %58 : vector<6x256xf32>
    %60 = arith.mulf %59, %36 : vector<6x256xf32>
    %61 = arith.addf %55, %60 : vector<6x256xf32>
    %62 = tpu.reciprocal %38 {approx = true} : vector<6x256xf32> -> vector<6x256xf32>
    %63 = arith.mulf %38, %62 : vector<6x256xf32>
    %cst_25 = arith.constant 2.000000e+00 : f32
    %64 = vector.broadcast %cst_25 : f32 to vector<6x256xf32>
    %65 = arith.subf %64, %63 : vector<6x256xf32>
    %66 = arith.mulf %62, %65 : vector<6x256xf32>
    %67 = arith.mulf %50, %66 : vector<6x256xf32>
    %68 = tpu.reciprocal %39 {approx = true} : vector<6x256xf32> -> vector<6x256xf32>
    %69 = arith.mulf %39, %68 : vector<6x256xf32>
    %cst_26 = arith.constant 2.000000e+00 : f32
    %70 = vector.broadcast %cst_26 : f32 to vector<6x256xf32>
    %71 = arith.subf %70, %69 : vector<6x256xf32>
    %72 = arith.mulf %68, %71 : vector<6x256xf32>
    %73 = arith.mulf %61, %72 : vector<6x256xf32>
    %74 = arith.addf %67, %73 : vector<6x256xf32>
    %75 = math.log %38 : vector<6x256xf32>
    %76 = math.log %39 : vector<6x256xf32>
    %77 = arith.addf %75, %76 : vector<6x256xf32>
    %78 = tpu.reciprocal %33 {approx = true} : vector<6x256xf32> -> vector<6x256xf32>
    %79 = arith.mulf %33, %78 : vector<6x256xf32>
    %cst_27 = arith.constant 2.000000e+00 : f32
    %80 = vector.broadcast %cst_27 : f32 to vector<6x256xf32>
    %81 = arith.subf %80, %79 : vector<6x256xf32>
    %82 = arith.mulf %78, %81 : vector<6x256xf32>
    %83 = arith.mulf %82, %82 : vector<6x256xf32>
    %84 = math.log %33 : vector<6x256xf32>
    %cst_28 = arith.constant 0.00416666688 : f32
    %85 = vector.broadcast %cst_28 : f32 to vector<6x256xf32>
    %86 = arith.mulf %83, %85 : vector<6x256xf32>
    %cst_29 = arith.constant 0.0039682542 : f32
    %87 = vector.broadcast %cst_29 : f32 to vector<6x256xf32>
    %88 = arith.subf %87, %86 : vector<6x256xf32>
    %89 = arith.mulf %83, %88 : vector<6x256xf32>
    %cst_30 = arith.constant 0.00833333377 : f32
    %90 = vector.broadcast %cst_30 : f32 to vector<6x256xf32>
    %91 = arith.subf %90, %89 : vector<6x256xf32>
    %92 = arith.mulf %83, %91 : vector<6x256xf32>
    %cst_31 = arith.constant 0.0833333358 : f32
    %93 = vector.broadcast %cst_31 : f32 to vector<6x256xf32>
    %94 = arith.subf %93, %92 : vector<6x256xf32>
    %95 = arith.mulf %83, %94 : vector<6x256xf32>
    %cst_32 = arith.constant 5.000000e-01 : f32
    %96 = vector.broadcast %cst_32 : f32 to vector<6x256xf32>
    %97 = arith.mulf %96, %82 : vector<6x256xf32>
    %98 = arith.subf %84, %97 : vector<6x256xf32>
    %99 = arith.subf %98, %95 : vector<6x256xf32>
    %100 = arith.subf %99, %74 : vector<6x256xf32>
    %cst_33 = arith.constant 7.93650805E-4 : f32
    %101 = vector.broadcast %cst_33 : f32 to vector<6x256xf32>
    %102 = arith.mulf %83, %101 : vector<6x256xf32>
    %cst_34 = arith.constant 0.00277777785 : f32
    %103 = vector.broadcast %cst_34 : f32 to vector<6x256xf32>
    %104 = arith.subf %103, %102 : vector<6x256xf32>
    %105 = arith.mulf %83, %104 : vector<6x256xf32>
    %cst_35 = arith.constant 0.0833333358 : f32
    %106 = vector.broadcast %cst_35 : f32 to vector<6x256xf32>
    %107 = arith.subf %106, %105 : vector<6x256xf32>
    %108 = arith.mulf %82, %107 : vector<6x256xf32>
    %cst_36 = arith.constant 5.000000e-01 : f32
    %109 = vector.broadcast %cst_36 : f32 to vector<6x256xf32>
    %110 = arith.subf %33, %109 : vector<6x256xf32>
    %111 = arith.mulf %110, %84 : vector<6x256xf32>
    %112 = arith.subf %111, %33 : vector<6x256xf32>
    %cst_37 = arith.constant 0.918938517 : f32
    %113 = vector.broadcast %cst_37 : f32 to vector<6x256xf32>
    %114 = arith.addf %112, %113 : vector<6x256xf32>
    %115 = arith.addf %114, %108 : vector<6x256xf32>
    %116 = arith.subf %115, %77 : vector<6x256xf32>
    %117 = vector.extract_strided_slice %100 {offsets = [0, 0], sizes = [4, 256], strides = [1, 1]} : vector<6x256xf32> to vector<4x256xf32>
    %118 = vector.extract_strided_slice %116 {offsets = [0, 0], sizes = [4, 256], strides = [1, 1]} : vector<6x256xf32> to vector<4x256xf32>
    %119 = vector.extract_strided_slice %100 {offsets = [4, 0], sizes = [1, 256], strides = [1, 1]} : vector<6x256xf32> to vector<1x256xf32>
    %120 = vector.extract_strided_slice %100 {offsets = [5, 0], sizes = [1, 256], strides = [1, 1]} : vector<6x256xf32> to vector<1x256xf32>
    %121 = vector.extract_strided_slice %116 {offsets = [5, 0], sizes = [1, 256], strides = [1, 1]} : vector<6x256xf32> to vector<1x256xf32>
    %cst_38 = arith.constant 5.000000e-01 : f32
    %122 = vector.broadcast %cst_38 : f32 to vector<4x256xf32>
    %123 = arith.cmpf oge, %8, %122 : vector<4x256xf32>
    %cst_39 = arith.constant -0.577215672 : f32
    %124 = vector.broadcast %cst_39 : f32 to vector<4x256xf32>
    %125 = arith.select %123, %124, %117 : vector<4x256xi1>, vector<4x256xf32>
    %cst_40 = arith.constant 0.000000e+00 : f32
    %126 = vector.broadcast %cst_40 : f32 to vector<4x256xf32>
    %127 = arith.select %123, %126, %118 : vector<4x256xi1>, vector<4x256xf32>
    %128 = vector.broadcast %119 : vector<1x256xf32> to vector<4x256xf32>
    %129 = arith.subf %128, %117 : vector<4x256xf32>
    %130 = arith.mulf %8, %129 : vector<4x256xf32>
    %cst_41 = arith.constant dense<0.000000e+00> : vector<256xf32>
    %131 = vector.multi_reduction <add>, %130, %cst_41 [0] : vector<4x256xf32> to vector<256xf32>
    %132 = vector.shape_cast %131 : vector<256xf32> to vector<1x256xf32>
    %cst_42 = arith.constant 1.79175949 : f32
    %133 = vector.broadcast %cst_42 : f32 to vector<1x256xf32>
    %134 = arith.subf %121, %133 : vector<1x256xf32>
    %cst_43 = arith.constant dense<0.000000e+00> : vector<256xf32>
    %135 = vector.multi_reduction <add>, %127, %cst_43 [0] : vector<4x256xf32> to vector<256xf32>
    %136 = vector.shape_cast %135 : vector<256xf32> to vector<1x256xf32>
    %137 = arith.subf %134, %136 : vector<1x256xf32>
    %cst_44 = arith.constant 1.000000e+00 : f32
    %138 = vector.broadcast %cst_44 : f32 to vector<4x256xf32>
    %139 = arith.subf %14, %138 : vector<4x256xf32>
    %140 = vector.broadcast %120 : vector<1x256xf32> to vector<4x256xf32>
    %141 = arith.subf %125, %140 : vector<4x256xf32>
    %142 = arith.mulf %139, %141 : vector<4x256xf32>
    %cst_45 = arith.constant dense<0.000000e+00> : vector<256xf32>
    %143 = vector.multi_reduction <add>, %142, %cst_45 [0] : vector<4x256xf32> to vector<256xf32>
    %144 = vector.shape_cast %143 : vector<256xf32> to vector<1x256xf32>
    %145 = arith.addf %137, %144 : vector<1x256xf32>
    %c0_46 = arith.constant 0 : index
    %c0_47 = arith.constant 0 : index
    %146 = vector.load %arg7[%c0_46, %c0_47] : memref<1x256xf32, #tpu.memory_space<vmem>>, vector<1x256xf32>
    %147 = arith.addf %146, %132 : vector<1x256xf32>
    %c0_48 = arith.constant 0 : index
    %c0_49 = arith.constant 0 : index
    %148 = vector.load %arg7[%c0_48, %c0_49] : memref<1x256xf32, #tpu.memory_space<vmem>>, vector<1x256xf32>
    tpu.vector_store %arg7[%c0_48, %c0_49], %147 {strides = array<i32>} : memref<1x256xf32, #tpu.memory_space<vmem>>, vector<1x256xf32>,
    %c0_50 = arith.constant 0 : index
    %c0_51 = arith.constant 0 : index
    %149 = vector.load %arg8[%c0_50, %c0_51] : memref<1x256xf32, #tpu.memory_space<vmem>>, vector<1x256xf32>
    %150 = arith.addf %149, %145 : vector<1x256xf32>
    %c0_52 = arith.constant 0 : index
    %c0_53 = arith.constant 0 : index
    %151 = vector.load %arg8[%c0_52, %c0_53] : memref<1x256xf32, #tpu.memory_space<vmem>>, vector<1x256xf32>
    tpu.vector_store %arg8[%c0_52, %c0_53], %150 {strides = array<i32>} : memref<1x256xf32, #tpu.memory_space<vmem>>, vector<1x256xf32>,
    %c1_i32 = arith.constant 1 : i32
    %152 = arith.cmpi eq, %arg1, %c1_i32 : i32
    %c0_i32_54 = arith.constant 0 : i32
    %153 = arith.cmpi eq, %arg2, %c0_i32_54 : i32
    %154 = arith.andi %152, %153 : i1
    %155 = arith.extui %154 : i1 to i32
    %c0_i32_55 = arith.constant 0 : i32
    %156 = arith.cmpi ne, %155, %c0_i32_55 : i32
    scf.if %156 {
      %c0_56 = arith.constant 0 : index
      %c0_57 = arith.constant 0 : index
      %157 = vector.load %arg7[%c0_56, %c0_57] : memref<1x256xf32, #tpu.memory_space<vmem>>, vector<1x256xf32>
      %158 = vector.shape_cast %157 : vector<1x256xf32> to vector<1x1x256xf32>
      %cst_58 = arith.constant dense<0.000000e+00> : vector<1xf32>
      %159 = vector.multi_reduction <add>, %158, %cst_58 [1, 2] : vector<1x1x256xf32> to vector<1xf32>
      %160 = vector.shape_cast %159 : vector<1xf32> to vector<1x1x1xf32>
      %161 = vector.extract %160[0, 0, 0] : f32 from vector<1x1x1xf32>
      %162 = vector.broadcast %161 : f32 to vector<1x1x128xf32>
      %c0_59 = arith.constant 0 : index
      %c0_60 = arith.constant 0 : index
      %c0_61 = arith.constant 0 : index
      %163 = vector.load %arg5[%c0_59, %c0_60, %c0_61] : memref<1x1x128xf32, #tpu.memory_space<vmem>>, vector<1x1x128xf32>
      tpu.vector_store %arg5[%c0_59, %c0_60, %c0_61], %162 {strides = array<i32>} : memref<1x1x128xf32, #tpu.memory_space<vmem>>, vector<1x1x128xf32>,
      %c0_62 = arith.constant 0 : index
      %c0_63 = arith.constant 0 : index
      %164 = vector.load %arg8[%c0_62, %c0_63] : memref<1x256xf32, #tpu.memory_space<vmem>>, vector<1x256xf32>
      %165 = vector.shape_cast %164 : vector<1x256xf32> to vector<1x1x256xf32>
      %cst_64 = arith.constant dense<0.000000e+00> : vector<1xf32>
      %166 = vector.multi_reduction <add>, %165, %cst_64 [1, 2] : vector<1x1x256xf32> to vector<1xf32>
      %167 = vector.shape_cast %166 : vector<1xf32> to vector<1x1x1xf32>
      %168 = vector.extract %167[0, 0, 0] : f32 from vector<1x1x1xf32>
      %169 = vector.broadcast %168 : f32 to vector<1x1x128xf32>
      %c0_65 = arith.constant 0 : index
      %c0_66 = arith.constant 0 : index
      %c0_67 = arith.constant 0 : index
      %170 = vector.load %arg6[%c0_65, %c0_66, %c0_67] : memref<1x1x128xf32, #tpu.memory_space<vmem>>, vector<1x1x128xf32>
      tpu.vector_store %arg6[%c0_65, %c0_66, %c0_67], %169 {strides = array<i32>} : memref<1x1x128xf32, #tpu.memory_space<vmem>>, vector<1x1x128xf32>,
    } else {
    }
    return
  }
  func.func @transform_0(%arg0: i32, %arg1: i32, %arg2: i32) -> (i32, i32, i32) {
    %c1_i32 = arith.constant 1 : i32
    %0 = arith.muli %arg0, %c1_i32 : i32
    %1 = arith.addi %0, %arg2 : i32
    %c0_i32 = arith.constant 0 : i32
    %c0_i32_0 = arith.constant 0 : i32
    return %arg1, %c0_i32, %1 : i32, i32, i32
  }
  func.func @transform_1(%arg0: i32, %arg1: i32, %arg2: i32) -> (i32, i32, i32) {
    %c1_i32 = arith.constant 1 : i32
    %0 = arith.muli %arg0, %c1_i32 : i32
    %1 = arith.addi %0, %arg2 : i32
    %c0_i32 = arith.constant 0 : i32
    %c0_i32_0 = arith.constant 0 : i32
    return %arg1, %c0_i32, %1 : i32, i32, i32
  }
  func.func @transform_2(%arg0: i32, %arg1: i32, %arg2: i32) -> (i32, i32, i32) {
    %c0_i32 = arith.constant 0 : i32
    %c0_i32_0 = arith.constant 0 : i32
    %c0_i32_1 = arith.constant 0 : i32
    return %arg0, %c0_i32, %c0_i32_0 : i32, i32, i32
  }
  func.func @transform_3(%arg0: i32, %arg1: i32, %arg2: i32) -> (i32, i32, i32) {
    %c0_i32 = arith.constant 0 : i32
    %c0_i32_0 = arith.constant 0 : i32
    %c0_i32_1 = arith.constant 0 : i32
    return %arg0, %c0_i32, %c0_i32_0 : i32, i32, i32
  }
}

</mosaic_0001>

<bundles_post_ra>
// kernel: tpu_custom_call.1
= control target key start
LH: loop header
LB: loop body
LE: loop exit
PB: predicated region body
PF: predicated region fallthrough
CT: control target
= control target key end

     0   :  { %s1641_s0 = inlined_call_operand.hbm [shape: f32[2,4,512], index: 0, kind: input, shape index: {}]   ;;  %s1642_s1 = inlined_call_operand.hbm [shape: f32[2,4,512], index: 1, kind: input, shape index: {}]   ;;  %s1643_s2 = inlined_call_operand.hbm [shape: f32[2,1,128], index: 2, kind: output, shape index: {0}]   ;;  %s1644_s3 = inlined_call_operand.hbm [shape: f32[2,1,128], index: 3, kind: output, shape index: {1}]  }
   0x1   :  { %1652 = sst [smem:[#allocation19_spill]] %s1641_s0 }
   0x2   :  { %9 = vsyncpa [#allocation5], 0 }
   0x3   :  { %11 = vsyncpa [#allocation5 + $0x1], 0 }
   0x4   :  { %12 = vsyncpa [#allocation8], 0 }
   0x5   :  { %14 = vsyncpa [#allocation8 + $0x1], 0 }
   0x6   :  { %15 = vsyncpa [#allocation6], 0 }
   0x7   :  { %17 = vsyncpa [#allocation6 + $0x1], 0 }
   0x8   :  { %18 = vsyncpa [#allocation11], 0 }
   0x9   :  { %20 = vsyncpa [#allocation11 + $0x1], 0  ;;  %s1257_s12 = smov 0   ;;  %s1259_s13 = smov 0  }
   0xa   :  { %s1261_s14 = smov 0   ;;  %s1263_s15 = smov 0  }
   0xb   :  { %s1265_s16 = smov 0   ;;  %s1267_s17 = smov 0  }
   0xc   :  { %s1269_s18 = smov 0   ;;  %s1271_s19 = smov 0  }
   0xd   :  { %s1273_s20 = smov 0   ;;  %s1275_s21 = smov 0  }
   0xe   :  { %s1277_s22 = smov 0  }
   0xf LB: > { %1653 = sst [smem:[#allocation16_spill]] %s1225_s21  ;;  %s840_s23 = sadd.s32 4294967295, %s1229_s22   ;;  %s1229_s22 = sphi %s1277_s22, %s26_s22   ;;  %s1225_s21 = sphi %s1275_s21, %s1673_s21   ;;  %s1221_s20 = sphi %s1273_s20, %s1681_s20   ;;  %s1217_s19 = sphi %s1271_s19, %s1671_s19   ;;  %s1213_s18 = sphi %s1269_s18, %s1680_s18   ;;  %s1209_s17 = sphi %s1267_s17, %s1679_s17   ;;  %s1205_s16 = sphi %s1265_s16, %s1678_s16   ;;  %s1201_s15 = sphi %s1263_s15, %s1677_s15   ;;  %s1197_s14 = sphi %s1261_s14, %s1676_s14   ;;  %s1193_s13 = sphi %s1259_s13, %s1675_s13   ;;  %s1189_s12 = sphi %s1257_s12, %s1674_s12  }
  0x10   : > { %s841_s24 = sadd.s32 4294967294, %s1229_s22   ;;  %s41_s25 = sadd.s32 1, %s1221_s20 }
  0x11   : > { %s45_s26 = sadd.s32 1, %s1225_s21  ;;  %p43_p0 = scmp.ge.s32.totalorder %s41_s25, 2 }
  0x12   : > { %s56_s27 = sadd.s32 1, %s1209_s17  ;;  %p63_p1 = scmp.ne.s32.totalorder %s1209_s17, %s1205_s16 }
  0x13   : > { %p64_p2 = scmp.eq.s32.totalorder %s1229_s22, 0  ;;  %s1683_s25 = smov (%p43_p0, %s41_s25), 0 }
  0x14   : > { %1654 = sst [smem:[#allocation17_spill]] %s1683_s25  ;;  %s1685_s26 = smov (!%p43_p0, %s45_s26), %s1225_s21 }
  0x15   : > { %s51_s28 = ssub.s32 %s1221_s20, %s1683_s25  ;;  %p1323_p3 = por %p64_p2, %p63_p1 }
  0x16   : > { %p47_p4 = scmp.ge.s32.totalorder %s1685_s26, 2  ;;  %p69_p5 = scmp.ne.s32.totalorder %s1205_s16, %s1201_s15 }
  0x17   : > { %p70_p6 = scmp.eq.s32.totalorder %s840_s23, 0  ;;  %s112_s30 = sadd.s32 1, %s1197_s14 }
  0x18   : > { %s1687_s26 = smov (%p47_p4, %s1685_s26), 0  ;;  %p122_p8 = scmp.ne.s32.totalorder %s1197_s14, %s1193_s13 }
  0x19   : > { %1656 = sst [smem:[#allocation18_spill]] %s1687_s26  ;;  %p1331_p7 = por %p70_p6, %p69_p5 }
  0x1a   : > { %s52_s5 = ssub.s32 %s1225_s21, %s1687_s26  ;;  %p123_p9 = scmp.eq.s32.totalorder %s840_s23, 3 }
  0x1b   : > { %s1657_s4 = scalar_select %p1331_p7, 1, 0 }
  0x1c   : > { %s53_s6 = sor.u32 %s52_s5, %s51_s28  ;;  %p110_p10 = scmp.eq.s32.totalorder %s52_s5, 0 }
  0x1d   : > { %p54_p11 = scmp.eq.s32.totalorder %s53_s6, 0  ;;  %p1339_p12 = por %p123_p9, %p122_p8 }
  0x1e   : > { %s1344_s8 = scalar_select %p110_p10, %s1197_s14, %s112_s30  }
  0x1f   : > { %s1658_s7 = scalar_select %p1339_p12, 1, 0 }
  0x20   : > { %s1347_s9 = scalar_select %p54_p11, %s1209_s17, %s56_s27  }
  0x21   : > { %p128_p13 = scmp.ne.s32.totalorder %s1193_s13, %s1189_s12  ;;  %p129_p0 = scmp.eq.s32.totalorder %s841_s24, 3 }
  0x22   : > { %p894_p1 = scmp.lt.s32.totalorder %s1229_s22, 4  ;;  %s1357_s11 = sand.u32 1, %s1209_s17  }
  0x23   : > { %p1352_p2 = por %p129_p0, %p128_p13  ;;  %s1647_s15 = sshll.u32 %s1357_s11, 3 }
  0x24   : > { %s845_s23 = sshll.u32 %s1225_s21, 1  ;;  %s846_s28 = sshll.u32 %s1221_s20, 2 }
  0x25   : > { %s1659_s10 = scalar_select %p1352_p2, 1, 0 }
  0x26   : > { %s179_s27 = scalar_lea.vmem [#allocation4], %s1647_s15  ;;  %s1364_s5 = sadd.s32 %s846_s28, %s845_s23 }
  0x27   : > { %s190_s30 = sshll.u32 %s179_s27, 4  ;;  %s1648_s24 = sshll.u32 %s1364_s5, 6  ;;  %s1366_s30 = int_to_ptr.vmem [resolvable:$true] %s190_s30 }
  0x28   : > { %p1371_p4 = pnand %p894_p1, %p1323_p3  ;;  %s1661_s0 = sld [smem:[#allocation19_spill]] }
  0x29   : > { %s176_s23 = scalar_lea.sflag [#allocation5], %s1357_s11 }
  0x2a   : > { %p1013_p8 = pneg %p1371_p4 }
  0x2e   : > { %s1380_s15 = scalar_lea.hbm %s1661_s0, %s1648_s24  ;;  %s1016_s28 = scalar_lea.hbm %s1661_s0, 512 }
  0x2f   : > { %s1011_s29 = scalar_lea.hbm %s1380_s15, 128  ;;  %p1017_p11 = scmp.lt.u32.totalorder %s1380_s15, %s1661_s0 }
  0x30   : > { %p1012_p3 = scmp.ne.s32.totalorder %s1380_s15, %s1011_s29  ;;  %p1018_p13 = scmp.lt.u32.totalorder %s1016_s28, %s1011_s29 }
  0x31   : > { %p1020_p1 = scmp.lt.u32.totalorder %s1011_s29, %s1380_s15 }
  0x32   : > { %p1014_p9 = pnand %p1013_p8, %p1012_p3  ;;  %p1019_p0 = por %p1018_p13, %p1017_p11 }
  0x34   : > { %p1015_p10 = pneg %p1014_p9  ;;  %p1021_p5 = por %p1020_p1, %p1019_p0 }
  0x36   : > { %p1022_p6 = pnand %p1021_p5, %p1015_p10 }
  0x38   : > { %1025 = shalt.err (!%p1022_p6)
}
  0x39   : > { %s1026_s21 = scalar_lea.vmem %s1366_s30, 128  ;;  %s1231_s25 = smov [#allocation4]  }
  0x3a   : > { %p1027_p3 = scmp.ne.s32.totalorder %s1366_s30, %s1026_s21  ;;  %s1031_s26 = sshll.u32 %s1231_s25, 4  ;;  %s1032_s26 = int_to_ptr.vmem [resolvable:$false] %s1031_s26 }
  0x3b   : > { %s1033_s24 = scalar_lea.vmem %s1032_s26, 256  ;;  %p1034_p12 = scmp.lt.s32.totalorder %s1366_s30, %s1032_s26 }
  0x3c   : > { %p1029_p9 = pnand %p1027_p3, %p1013_p8  ;;  %p1035_p11 = scmp.lt.s32.totalorder %s1033_s24, %s1026_s21 }
  0x3e   : > { %p1030_p2 = pneg %p1029_p9  ;;  %p1036_p13 = por %p1035_p11, %p1034_p12 }
  0x40   : > { %p1037_p0 = pnand %p1036_p13, %p1030_p2 }
  0x42   : > { %1040 = shalt.err (!%p1037_p0)
}
  0x43   : > { %883 = dma.hbm_to_vmem [thread:$0]  (!%p1371_p4), %s1380_s15, 128, %s1366_s30, %s176_s23  }
  0x44   : > { %p1662_p5 = scmp.lt.s32.totalorder %s1229_s22, 5  ;;  %p1663_p6 = scmp.ge.s32.totalorder %s1229_s22, 1 }
  0x45   : > { %s1665_s21 = sshll.u32 %s1364_s5, 6  ;;  %s1666_s26 = sshll.u32 %s1357_s11, 3 }
  0x46   : > { %p1414_p10 = pnand %p1663_p6, %p1662_p5  ;;  %s1423_s25 = scalar_lea.hbm %s1642_s1, %s1665_s21 }
  0x47   : > { %s201_s24 = scalar_lea.vmem [#allocation7], %s1666_s26  ;;  %s198_s15 = scalar_lea.sflag [#allocation8], %s1357_s11 }
  0x48   : > { %s1664_s29 = scalar_select %p1414_p10, 1, 0 }
  0x49   : > { %s212_s0 = sshll.u32 %s201_s24, 4  ;;  %s1041_s30 = scalar_lea.hbm %s1423_s25, 128  ;;  %s213_s0 = int_to_ptr.vmem [resolvable:$true] %s212_s0 }
  0x4a   : > { %p1042_p12 = scmp.ne.s32.totalorder %s1423_s25, %s1041_s30  ;;  %s1046_s21 = scalar_lea.hbm %s1642_s1, 512 }
  0x4b   : > { %p1047_p3 = scmp.lt.u32.totalorder %s1423_s25, %s1642_s1  ;;  %p1048_p9 = scmp.lt.u32.totalorder %s1046_s21, %s1041_s30 }
  0x4c   : > { %p1044_p2 = pnand %p1042_p12, %p1013_p8  ;;  %p1050_p13 = scmp.lt.u32.totalorder %s1041_s30, %s1423_s25 }
  0x4d   : > { %p1049_p11 = por %p1048_p9, %p1047_p3 }
  0x4e   : > { %p1045_p1 = pneg %p1044_p2 }
  0x4f   : > { %p1051_p0 = por %p1050_p13, %p1049_p11 }
  0x51   : > { %p1052_p5 = pnand %p1051_p0, %p1045_p1 }
  0x53   : > { %1055 = shalt.err (!%p1052_p5)
}
  0x54   : > { %s1056_s11 = scalar_lea.vmem %s213_s0, 128  ;;  %s1232_s26 = smov [#allocation7]  }
  0x55   : > { %p1057_p6 = scmp.ne.s32.totalorder %s213_s0, %s1056_s11  ;;  %s1061_s24 = sshll.u32 %s1232_s26, 4  ;;  %s1062_s24 = int_to_ptr.vmem [resolvable:$false] %s1061_s24 }
  0x56   : > { %s1063_s5 = scalar_lea.vmem %s1062_s24, 256  ;;  %p1064_p7 = scmp.lt.s32.totalorder %s213_s0, %s1062_s24 }
  0x57   : > { %p1059_p12 = pnand %p1057_p6, %p1013_p8  ;;  %p1065_p10 = scmp.lt.s32.totalorder %s1063_s5, %s1056_s11 }
  0x59   : > { %p1060_p2 = pneg %p1059_p12  ;;  %p1066_p3 = por %p1065_p10, %p1064_p7 }
  0x5b   : > { %p1067_p9 = pnand %p1066_p3, %p1060_p2 }
  0x5d   : > { %1070 = shalt.err (!%p1067_p9)
}
  0x5e   : > { %886 = dma.hbm_to_vmem [thread:$0]  (!%p1371_p4), %s1423_s25, 128, %s213_s0, %s198_s15  }
  0x5f   : > { %p1667_p1 = scmp.ne.s32.totalorder %s1664_s29, 0 }
  0x60   : > { %s223_s30 = sand.u32 (!%p1667_p1), 1, %s1205_s16   ;;  %p1668_p8 = scmp.ne.s32.totalorder (!%p1667_p1), %s1657_s4, 0 }
  0x61   : > { %221 = sbr.rel (%p1667_p1) target bundleno = 490 (0x1ea), region = 28  ;;  %s853_s23 = sshll.u32 (!%p1667_p1), %s223_s30, 3 }
  0x62   : > { %s224_s21 = scalar_lea.sflag (!%p1667_p1), [#allocation5], %s223_s30  ;;  %s227_s28 = scalar_lea.vmem (!%p1667_p1), [#allocation4], %s853_s23 }
  0x68   : > { %1172 = dma.done.wait (%p1668_p8), %s224_s21, 128  }
  0x69   : > { %1174 = vsyncadd (%p1668_p8), %s224_s21, 4294967168  ;;  %s233_s27 = scalar_lea.sflag [#allocation8], %s223_s30  ;;  %s236_s11 = scalar_lea.vmem [#allocation7], %s853_s23 }
  0x6a   : > { %1176 = dma.done.wait (%p1668_p8), %s233_s27, 128  }
  0x6b   : > { %1178 = vsyncadd (%p1668_p8), %s233_s27, 4294967168  ;;  %s1459_s0 = sand.u32 1, %s1193_s13   ;;  %p271_p7 = scmp.eq.s32.totalorder %s1213_s18, 0 }
  0x6c   : > { %s260_s6 = scalar_lea.vmem [#allocation9], %s1459_s0  ;;  %s266_s29 = scalar_lea.vmem [#allocation10], %s1459_s0  ;;  %v277_v0 = vlaneseq (%p271_p7)  ;;  %v1233_v1 = vmov (%p271_p7), 0.0  }
  0x6d   : > { %276 = sbr.rel (!%p271_p7) target bundleno = 116 (0x74), region = 40 }
  0x6e   : > { %vm279_vm0 = vcmp.lt.s32.totalorder (%p271_p7), %v277_v0, 256 }
  0x6f   : > { %281 = vst.msk [vmem:[#allocation2] sm:$0x3] (%p271_p7), %vm279_vm0, %v1233_v1  ;;  %282 = vst.msk [vmem:[#allocation3] sm:$0x3] (%p271_p7), %vm279_vm0, %v1233_v1 }
  0x74 PF: > { %v283_v2 = vld [vmem:[%s227_s28] sm:$0xff]  ;;  %v1464_v3 = vld [vmem:[%s236_s11] sm:$0xff]  ;;  %vm288_vm1 = vcmask 1043456   ;;  %p613_p4 = scmp.eq.s32.totalorder %s1213_s18, 1  ;;  %vm325_vm2 = vcmask 1044480  }
  0x75   : > { %v286_v4 = vcombine.high %v283_v2, %v283_v2  ;;  %v289_v5 = vsel %vm288_vm1, %v283_v2, 0.0  ;;  %v303_v6 = vsub.f32 1.0, %v1464_v3  ;;  %vm468_vm3 = vcmp.ge.f32.partialorder %v1464_v3, 0.5 }
  0x76   : > { %v290_v7 = vrot.slane %v289_v5, 4  ;;  %vm630_vm5 = vcmask (%p613_p4), 1040384  }
  0x77   : > { %v296_v8 = vsel %vm288_vm1, %v286_v4, 0.0  ;;  %v304_v9 = vmul.f32 %v303_v6, %v283_v2 }
  0x78   : > { %v291_v10 = vadd.f32 %v290_v7, %v289_v5  ;;  %v297_v11 = vrot.slane %v296_v8, 4 }
  0x79   : > { %v1471_v12 = vadd.f32 %v304_v9, %v1464_v3 }
  0x7a   : > { %v292_v13 = vrot.slane %v291_v10, 2  ;;  %v298_v14 = vadd.f32 %v297_v11, %v296_v8 }
  0x7b   : > { %v307_v15 = vcombine.high %v1471_v12, %v1471_v12  ;;  %v309_v16 = vsel %vm288_vm1, %v1471_v12, 0.0 }
  0x7c   : > { %v293_v17 = vadd.f32 %v292_v13, %v291_v10  ;;  %v299_v18 = vrot.slane %v298_v14, 2  ;;  %v310_v19 = vrot.slane %v309_v16, 4 }
  0x7d   : > { %v316_v20 = vsel %vm288_vm1, %v307_v15, 0.0 }
  0x7e   : > { %v294_v21 = vrot.slane %v293_v17, 1  ;;  %v311_v22 = vadd.f32 %v310_v19, %v309_v16  ;;  %v317_v23 = vrot.slane %v316_v20, 4  ;;  %v300_v24 = vadd.f32 %v299_v18, %v298_v14 }
  0x80   : > { %v312_v25 = vrot.slane %v311_v22, 2  ;;  %v318_v26 = vadd.f32 %v317_v23, %v316_v20  ;;  %v295_v27 = vadd.f32 %v294_v21, %v293_v17  ;;  %v301_v30 = vrot.slane %v300_v24, 1 }
  0x81   : > { %v479_v20 = vlaneseq }
  0x82   : > { %v313_v28 = vadd.f32 %v312_v25, %v311_v22  ;;  %v319_v29 = vrot.slane %v318_v26, 2  ;;  %v323_v35 = vsel %vm288_vm1, %v283_v2, %v295_v27  ;;  %v302_v36 = vadd.f32 %v301_v30, %v300_v24 }
  0x83   : > { %vm588_vm4 = vcmp.lt.s32.totalorder %v479_v20, 256 }
  0x84   : > { %v314_v31 = vrot.slane %v313_v28, 1  ;;  %v320_v32 = vadd.f32 %v319_v29, %v318_v26  ;;  %v324_v39 = vsel %vm288_vm1, %v286_v4, %v302_v36 }
  0x86   : > { %v315_v33 = vadd.f32 %v314_v31, %v313_v28  ;;  %v321_v34 = vrot.slane %v320_v32, 1 }
  0x88   : > { %v326_v37 = vsel %vm325_vm2, %v323_v35, %v315_v33  ;;  %v322_v38 = vadd.f32 %v321_v34, %v320_v32 }
  0x89   : > { %v1480_v40 = vadd.f32 8.0, %v326_v37  ;;  %v328_v41 = vadd.f32 1.0, %v326_v37  ;;  %v330_v42 = vadd.f32 2.0, %v326_v37  ;;  %v332_v43 = vadd.f32 3.0, %v326_v37 }
  0x8a   : > { %v334_v44 = vadd.f32 4.0, %v326_v37  ;;  %v327_v45 = vsel %vm325_vm2, %v324_v39, %v322_v38  ;;  %v336_v46 = vadd.f32 5.0, %v326_v37  ;;  %v338_v47 = vadd.f32 6.0, %v326_v37 }
  0x8b   : > { %v340_v48 = vadd.f32 7.0, %v326_v37  ;;  %v329_v49 = vadd.f32 1.0, %v327_v45  ;;  %v331_v50 = vadd.f32 2.0, %v327_v45  ;;  %v333_v51 = vadd.f32 3.0, %v327_v45 }
  0x8c   : > { %v335_v52 = vadd.f32 4.0, %v327_v45  ;;  %v337_v53 = vadd.f32 5.0, %v327_v45  ;;  %v339_v54 = vadd.f32 6.0, %v327_v45  ;;  %v341_v55 = vadd.f32 7.0, %v327_v45 }
  0x8d   : > { %987 = vrcp.f32 %v1480_v40  ;;  %v344_v56 = vmul.f32 %v328_v41, %v326_v37  ;;  %v346_v57 = vmul.f32 %v332_v43, %v330_v42  ;;  %v348_v58 = vmul.f32 %v336_v46, %v334_v44 }
  0x8e   : > { %v350_v59 = vmul.f32 %v340_v48, %v338_v47  ;;  %v345_v60 = vmul.f32 %v329_v49, %v327_v45  ;;  %v347_v61 = vmul.f32 %v333_v51, %v331_v50  ;;  %v1483_v62 = vmul.f32 %v337_v53, %v335_v52 }
  0x8f   : > { %v351_v63 = vmul.f32 %v341_v55, %v339_v54  ;;  %v352_v0 = vmul.f32 %v346_v57, %v344_v56  ;;  %v1488_v5 = vadd.f32 8.0, %v327_v45  ;;  %v356_v8 = vmul.f32 2.0, %v326_v37 }
  0x90   : > { %v354_v1 = vmul.f32 %v350_v59, %v348_v58  ;;  %v353_v2 = vmul.f32 %v347_v61, %v345_v60  ;;  %v357_v10 = vmul.f32 2.0, %v327_v45  ;;  %v856_v29 = vadd.f32 -0.5, %v1480_v40 }
  0x91   : > { %v1486_v4 = vmul.f32 %v351_v63, %v1483_v62  ;;  %989 = vrcp.f32 %v352_v0  ;;  %v358_v13 = vadd.f32 1.0, %v356_v8  ;;  %v362_v16 = vadd.f32 5.0, %v356_v8 }
  0x92   : > { %991 = vrcp.f32 %v354_v1  ;;  %v359_v15 = vadd.f32 1.0, %v357_v10  ;;  %v363_v22 = vadd.f32 5.0, %v357_v10  ;;  %v368_v23 = vadd.f32 9.0, %v356_v8 }
  0x93   : > { %993 = vrcp.f32 %v353_v2  ;;  %v372_v24 = vadd.f32 13.0, %v356_v8  ;;  %v360_v26 = vmul.f32 %v358_v13, %v346_v57  ;;  %v369_v27 = vadd.f32 9.0, %v357_v10 }
  0x94   : > { %995 = vrcp.f32 %v1486_v4  ;;  %v361_v31 = vmul.f32 %v359_v15, %v347_v61  ;;  %v364_v32 = vmul.f32 %v362_v16, %v344_v56  ;;  %v373_v33 = vadd.f32 13.0, %v357_v10 }
  0x95   : > { %997 = vrcp.f32 %v1488_v5  ;;  %v365_v41 = vmul.f32 %v363_v22, %v345_v60  ;;  %v370_v42 = vmul.f32 %v368_v23, %v350_v59  ;;  %v374_v43 = vmul.f32 %v372_v24, %v348_v58 }
  0x96   : > { %999 = vlog2.f32 %v1480_v40  ;;  %v371_v50 = vmul.f32 %v369_v27, %v351_v63  ;;  %v857_v53 = vadd.f32 -0.5, %v1488_v5  ;;  %v366_v59 = vadd.f32 %v364_v32, %v360_v26 }
  0x97   : > { %v988_v6 = vpop.eup %987  ;;  %1001 = vlog2.f32 %v1488_v5  ;;  %v375_v60 = vmul.f32 %v373_v33, %v1483_v62  ;;  %v367_v63 = vadd.f32 %v365_v41, %v361_v31 }
  0x98   : > { %v412_v7 = vmul.f32 %v988_v6, %v1480_v40  ;;  %1003 = vlog2.f32 %v352_v0 }
  0x99   : > { %1005 = vlog2.f32 %v353_v2  ;;  %v377_v22 = vadd.f32 %v375_v60, %v371_v50 }
  0x9a   : > { %v414_v9 = vsub.f32 2.0, %v412_v7  ;;  %1007 = vlog2.f32 %v354_v1 }
  0x9b   : > { %v990_v17 = vpop.eup %989  ;;  %1009 = vlog2.f32 %v1486_v4 }
  0x9c   : > { %v1494_v11 = vmul.f32 %v988_v6, %v414_v9  ;;  %v992_v21 = vpop.eup %991  ;;  %v380_v36 = vmul.f32 %v990_v17, %v352_v0 }
  0x9d   : > { %v994_v25 = vpop.eup %993  ;;  %v390_v37 = vmul.f32 %v992_v21, %v354_v1 }
  0x9e   : > { %v1499_v14 = vmul.f32 %v1494_v11, %v1494_v11  ;;  %v1504_v30 = vpop.eup %995  ;;  %v381_v46 = vmul.f32 %v994_v25, %v353_v2  ;;  %v382_v54 = vsub.f32 2.0, %v380_v36  ;;  %v376_v2 = vadd.f32 %v374_v43, %v370_v42 }
  0x9f   : > { %v998_v35 = vpop.eup %997  ;;  %v392_v55 = vsub.f32 2.0, %v390_v37  ;;  %v391_v61 = vmul.f32 %v1504_v30, %v1486_v4  ;;  %v438_v10 = vmul.f32 0.5, %v1494_v11 }
  0xa0   : > { %v424_v18 = vmul.f32 0.004166667, %v1499_v14  ;;  %v446_v19 = vmul.f32 0.0007936508, %v1499_v14  ;;  %v1000_v39 = vpop.eup %999  ;;  %v413_v44 = vmul.f32 %v998_v35, %v1488_v5  ;;  %v383_v6 = vsub.f32 2.0, %v381_v46 }
  0xa1   : > { %v1002_v45 = vpop.eup %1001  ;;  %v421_v47 = vmul.f32 0.6931472, %v1000_v39  ;;  %v384_v16 = vmul.f32 %v990_v17, %v382_v54  ;;  %v393_v4 = vsub.f32 2.0, %v391_v61 }
  0xa2   : > { %v426_v28 = vsub.f32 0.003968254, %v424_v18  ;;  %v448_v34 = vsub.f32 0.0027777778, %v446_v19  ;;  %v415_v51 = vsub.f32 2.0, %v413_v44  ;;  %v1004_v58 = vpop.eup %1003  ;;  %v394_v18 = vmul.f32 %v992_v21, %v392_v55 }
  0xa3   : > { %v1510_v52 = vmul.f32 0.6931472, %v1002_v45  ;;  %v458_v57 = vmul.f32 %v856_v29, %v421_v47  ;;  %v1006_v1 = vpop.eup %1005  ;;  %v401_v62 = vmul.f32 0.6931472, %v1004_v58  ;;  %v385_v27 = vmul.f32 %v994_v25, %v383_v6 }
  0xa4   : > { %v428_v38 = vmul.f32 %v426_v28, %v1499_v14  ;;  %v450_v49 = vmul.f32 %v448_v34, %v1499_v14  ;;  %v417_v0 = vmul.f32 %v998_v35, %v415_v51  ;;  %v1008_v8 = vpop.eup %1007  ;;  %v403_v28 = vmul.f32 0.6931472, %v1006_v1 }
  0xa5   : > { %v459_v13 = vmul.f32 %v857_v53, %v1510_v52  ;;  %v460_v15 = vsub.f32 %v458_v57, %v1480_v40  ;;  %v1010_v26 = vpop.eup %1009  ;;  %v405_v29 = vmul.f32 0.6931472, %v1008_v8  ;;  %v386_v40 = vmul.f32 %v384_v16, %v366_v59 }
  0xa6   : > { %v430_v48 = vsub.f32 0.008333334, %v428_v38  ;;  %v452_v7 = vsub.f32 0.083333336, %v450_v49  ;;  %v419_v9 = vmul.f32 %v417_v0, %v417_v0  ;;  %v396_v17 = vmul.f32 %v394_v18, %v376_v2 }
  0xa7   : > { %v461_v34 = vsub.f32 %v459_v13, %v1488_v5  ;;  %v462_v35 = vadd.f32 0.9189385, %v460_v15  ;;  %v440_v36 = vsub.f32 %v421_v47, %v438_v10  ;;  %v395_v37 = vmul.f32 %v1504_v30, %v393_v4 }
  0xa8   : > { %v432_v56 = vmul.f32 %v430_v48, %v1499_v14  ;;  %v425_v23 = vmul.f32 0.004166667, %v419_v9  ;;  %v447_v24 = vmul.f32 0.0007936508, %v419_v9  ;;  %v454_v31 = vmul.f32 %v452_v7, %v1494_v11 }
  0xa9   : > { %v407_v38 = vmul.f32 0.6931472, %v1010_v26  ;;  %v408_v25 = vadd.f32 %v405_v29, %v401_v62  ;;  %v439_v42 = vmul.f32 0.5, %v417_v0  ;;  %v463_v11 = vadd.f32 0.9189385, %v461_v34 }
  0xaa   : > { %v434_v19 = vsub.f32 0.083333336, %v432_v56  ;;  %v427_v32 = vsub.f32 0.003968254, %v425_v23  ;;  %v449_v33 = vsub.f32 0.0027777778, %v447_v24  ;;  %v464_v45 = vadd.f32 %v462_v35, %v454_v31 }
  0xab   : > { %v387_v46 = vmul.f32 %v385_v27, %v367_v63  ;;  %v398_v48 = vadd.f32 %v396_v17, %v386_v40  ;;  %v1525_v49 = vshrl.u32 %v479_v20, 7  ;;  %v397_v50 = vmul.f32 %v395_v37, %v377_v22 }
  0xac   : > { %v436_v21 = vmul.f32 %v434_v19, %v1499_v14  ;;  %v429_v39 = vmul.f32 %v427_v32, %v419_v9  ;;  %v451_v41 = vmul.f32 %v449_v33, %v419_v9  ;;  %v409_v14 = vadd.f32 %v407_v38, %v403_v28 }
  0xad   : > { %v481_v30 = vsub.s32 4, %v1525_v49  ;;  %v441_v54 = vsub.f32 %v1510_v52, %v439_v42  ;;  %v466_v56 = vsub.f32 %v464_v45, %v408_v25  ;;  %v399_v58 = vadd.f32 %v397_v50, %v387_v46 }
  0xae   : > { %v431_v43 = vsub.f32 0.008333334, %v429_v39  ;;  %v453_v44 = vsub.f32 0.083333336, %v451_v41  ;;  %v442_v5 = vsub.f32 %v440_v36, %v436_v21  ;;  %v535_v1 = vsub.s32 5, %v1525_v49 }
  0xaf   : > { %v860_v23 = vadd.f32 -1.0, %v1471_v12  ;;  %v858_v46 = vadd.f32 -1.7917595, %v466_v56 }
  0xb0   : > { %v433_v47 = vmul.f32 %v431_v43, %v419_v9  ;;  %v455_v51 = vmul.f32 %v453_v44, %v417_v0  ;;  %v444_v57 = vsub.f32 %v442_v5, %v398_v48 }
  0xb2   : > { %v435_v53 = vsub.f32 0.083333336, %v433_v47  ;;  %v465_v55 = vadd.f32 %v463_v11, %v455_v51  ;;  %v482_v61 = vrot.slane %v444_v57, %v481_v30  ;;  %v536_v52 = vrot.slane %v444_v57, %v535_v1 }
  0xb3   : > { %v1234_v51 = vmov 1966171168  }
  0xb4   : > { %v437_v59 = vmul.f32 %v435_v53, %v419_v9  ;;  %v467_v60 = vsub.f32 %v465_v55, %v409_v14  ;;  %v487_v7 = vsub.f32 %v482_v61, %v444_v57 }
  0xb6   : > { %v443_v63 = vsub.f32 %v441_v54, %v437_v59  ;;  %v476_v2 = vcombine.low %v466_v56, %v467_v60  ;;  %v859_v53 = vadd.f32 -1.7917595, %v467_v60 }
  0xb8   : > { %v445_v6 = vsub.f32 %v443_v63, %v399_v58  ;;  %v478_v0 = vsel %vm468_vm3, 0.0, %v476_v2 }
  0xb9   : > { %v514_v8 = vcombine.high %v478_v0, %v478_v0  ;;  %v516_v10 = vsel %vm288_vm1, %v478_v0, 0.0 }
  0xba   : > { %v471_v13 = vcombine.low %v444_v57, %v445_v6  ;;  %v486_v15 = vrot.slane %v445_v6, %v481_v30  ;;  %v517_v16 = vrot.slane %v516_v10, 4  ;;  %v540_v18 = vrot.slane %v445_v6, %v535_v1 }
  0xbb   : > { %v523_v9 = vsel %vm288_vm1, %v514_v8, 0.0  ;;  %v571_v30 = vunpack.c.l.s4 %v1234_v51 }
  0xbc   : > { %v473_v62 = vsel %vm468_vm3, -0.5772157, %v471_v13  ;;  %v488_v19 = vsub.f32 %v486_v15, %v445_v6  ;;  %v518_v22 = vadd.f32 %v517_v16, %v516_v10  ;;  %v524_v4 = vrot.slane %v523_v9, 4 }
  0xbd   : > { %v543_v24 = vcombine.low %v536_v52, %v540_v18  ;;  %v572_v0 = vunpack.c.0.s8 %v571_v30 }
  0xbe   : > { %v491_v26 = vcombine.low %v487_v7, %v488_v19  ;;  %v519_v27 = vrot.slane %v518_v22, 2  ;;  %v525_v28 = vadd.f32 %v524_v4, %v523_v9  ;;  %v566_v9 = vld [vmem:[#allocation2] sm:$0x3] }
  0xbf   : > { %v545_v29 = vsub.f32 %v473_v62, %v543_v24  ;;  %v575_v60 = vsub.s32 %v572_v0, %v1525_v49  ;;  %v591_v24 = vld [vmem:[#allocation3] sm:$0x3] }
  0xc0   : > { %v493_v31 = vmul.f32 %v491_v26, %v1464_v3  ;;  %v520_v32 = vadd.f32 %v519_v27, %v518_v22  ;;  %v526_v33 = vrot.slane %v525_v28, 2 }
  0xc1   : > { %v546_v34 = vmul.f32 %v860_v23, %v545_v29  ;;  %v622_v29 = vsub.s32 (%p613_p4), 0, %v1525_v49 }
  0xc2   : > { %v495_v35 = vcombine.high %v493_v31, %v493_v31  ;;  %v497_v40 = vsel %vm288_vm1, %v493_v31, 0.0  ;;  %v527_v17 = vadd.f32 %v526_v33, %v525_v28  ;;  %v521_v38 = vrot.slane %v520_v32, 1 }
  0xc3   : > { %v498_v21 = vrot.slane %v497_v40, 4  ;;  %v548_v36 = vcombine.high %v546_v34, %v546_v34  ;;  %v550_v37 = vsel %vm288_vm1, %v546_v34, 0.0  ;;  %v626_v31 = vsub.s32 (%p613_p4), 1, %v1525_v49 }
  0xc4   : > { %v504_v12 = vsel %vm288_vm1, %v495_v35, 0.0  ;;  %v551_v39 = vrot.slane %v550_v37, 4  ;;  %v528_v3 = vrot.slane %v527_v17, 1  ;;  %v522_v48 = vadd.f32 %v521_v38, %v520_v32 }
  0xc5   : > { %v499_v41 = vadd.f32 %v498_v21, %v497_v40  ;;  %v505_v25 = vrot.slane %v504_v12, 4  ;;  %v557_v42 = vsel %vm288_vm1, %v548_v36, 0.0 }
  0xc6   : > { %v552_v43 = vadd.f32 %v551_v39, %v550_v37  ;;  %v558_v44 = vrot.slane %v557_v42, 4  ;;  %v529_v54 = vadd.f32 %v528_v3, %v527_v17  ;;  %v530_v61 = vsub.f32 %v858_v46, %v522_v48 }
  0xc7   : > { %v500_v11 = vrot.slane %v499_v41, 2  ;;  %v506_v45 = vadd.f32 %v505_v25, %v504_v12 }
  0xc8   : > { %v553_v5 = vrot.slane %v552_v43, 2  ;;  %v559_v50 = vadd.f32 %v558_v44, %v557_v42  ;;  %v531_v56 = vsub.f32 %v859_v53, %v529_v54 }
  0xc9   : > { %v501_v14 = vadd.f32 %v500_v11, %v499_v41  ;;  %v507_v47 = vrot.slane %v506_v45, 2 }
  0xca   : > { %v554_v55 = vadd.f32 %v553_v5, %v552_v43  ;;  %v560_v57 = vrot.slane %v559_v50, 2 }
  0xcb   : > { %v502_v58 = vrot.slane %v501_v14, 1  ;;  %v508_v59 = vadd.f32 %v507_v47, %v506_v45 }
  0xcc   : > { %v555_v1 = vrot.slane %v554_v55, 1  ;;  %v561_v63 = vadd.f32 %v560_v57, %v559_v50 }
  0xcd   : > { %v503_v2 = vadd.f32 %v502_v58, %v501_v14  ;;  %v509_v6 = vrot.slane %v508_v59, 1 }
  0xce   : > { %v556_v7 = vadd.f32 %v555_v1, %v554_v55  ;;  %v562_v8 = vrot.slane %v561_v63, 1 }
  0xcf   : > { %v510_v10 = vadd.f32 %v509_v6, %v508_v59 }
  0xd0   : > { %v563_v52 = vadd.f32 %v562_v8, %v561_v63  ;;  %v564_v13 = vadd.f32 %v556_v7, %v530_v61 }
  0xd1   : > { %v569_v15 = vcombine.low %v503_v2, %v510_v10 }
  0xd2   : > { %v565_v16 = vadd.f32 %v563_v52, %v531_v56 }
  0xd3   : > { %v576_v18 = vrot.slane %v569_v15, %v575_v60 }
  0xd4   : > { %v594_v62 = vcombine.high %v564_v13, %v565_v16 }
  0xd5   : > { %v583_v19 = vrot.slane %v576_v18, %v575_v60 }
  0xd6   : > { %v601_v22 = vrot.slane %v594_v62, %v575_v60 }
  0xd7   : > { %v585_v4 = vadd.f32 %v583_v19, %v566_v9 }
  0xd8   : > { %v602_v23 = vcombine.high %v601_v22, %v601_v22  ;;  %617 = sbr.rel (!%p613_p4) target bundleno = 441 (0x1b9), region = 44 }
  0xd9   : > { %590 = vst.msk [vmem:[#allocation2] sm:$0x3] %vm588_vm4, %v585_v4 }
  0xda   : > { %v609_v26 = vrot.slane %v602_v23, %v575_v60 }
  0xdc   : > { %v611_v27 = vadd.f32 %v609_v26, %v591_v24 }
  0xde   : > { %612 = vst.msk [vmem:[#allocation3] sm:$0x3] %vm588_vm4, %v611_v27 }
  0xe0   : > { %v618_v28 = vld [vmem:[#allocation2] sm:$0x3] }
  0xe1   : > { %v623_v33 = vrot.slane %v618_v28, %v622_v29  ;;  %v627_v20 = vrot.slane %v618_v28, %v626_v31 }
  0xe3   : > { %v631_v40 = vsel %vm630_vm5, %v623_v33, 0.0  ;;  %v632_v17 = vsel %vm630_vm5, %v627_v20, 0.0 }
  0xe4   : > { %v633_v37 = vadd.f32 %v632_v17, %v631_v40 }
  0xe5   : > { %v645_v32 = vld [vmem:[#allocation3] sm:$0x3] }
  0xe6   : > { %v650_v34 = vrot.slane %v645_v32, %v622_v29  ;;  %v654_v35 = vrot.slane %v645_v32, %v626_v31  ;;  %634 = vadd.xlane.f32.xlu0 %v633_v37 }
  0xe8   : > { %v657_v21 = vsel %vm630_vm5, %v650_v34, 0.0  ;;  %v658_v36 = vsel %vm630_vm5, %v654_v35, 0.0 }
  0xe9   : > { %v659_v12 = vadd.f32 %v658_v36, %v657_v21 }
  0xeb   : > { %660 = vadd.xlane.f32.xlu0 %v659_v12 }
 0x173   : > { %v635_v38 = vpop.xlane.xlu0 %634 }
 0x174   : > { %v636_v39 = vrot.slane %v635_v38, 4 }
 0x176   : > { %v637_v41 = vadd.f32 %v636_v39, %v635_v38 }
 0x178   : > { %v661_v25 = vpop.xlane.xlu0 %660  ;;  %v638_v49 = vrot.slane %v637_v41, 2 }
 0x179   : > { %v662_v42 = vrot.slane %v661_v25, 4 }
 0x17a   : > { %v639_v43 = vadd.f32 %v638_v49, %v637_v41 }
 0x17b   : > { %v663_v3 = vadd.f32 %v662_v42, %v661_v25 }
 0x17c   : > { %v640_v11 = vrot.slane %v639_v43, 1 }
 0x17d   : > { %v664_v44 = vrot.slane %v663_v3, 2 }
 0x17e   : > { %v641_v46 = vadd.f32 %v640_v11, %v639_v43 }
 0x17f   : > { %v665_v45 = vadd.f32 %v664_v44, %v663_v3 }
 0x180   : > { %868 = vpush %v641_v46 }
 0x181   : > { %v666_v48 = vrot.slane %v665_v45, 1 }
 0x183   : > { %v667_v5 = vadd.f32 %v666_v48, %v665_v45 }
 0x185   : > { %870 = vpush %v667_v5 }
 0x1b1   : > { %s869_s18 = spop %868 }
 0x1b2   : > { %v643_v50 = vstv %s869_s18 }
 0x1b3   : > { %644 = vst [vmem:[%s260_s6] sm:$0x1] %v643_v50 }
 0x1b6   : > { %s871_s4 = spop %870 }
 0x1b7   : > { %v669_v14 = vstv %s871_s4 }
 0x1b8   : > { %670 = vst [vmem:[%s266_s29] sm:$0x1] %v669_v14 }
 0x1b9 PF: > { %s862_s25 = sshll.u32 %s1217_s19, 4  ;;  %s688_s5 = sshll.u32 %s260_s6, 4  ;;  %s689_s5 = int_to_ptr.vmem [resolvable:$true] %s688_s5 }
 0x1ba   : > { %s1555_s24 = scalar_lea.hbm %s1643_s2, %s862_s25  ;;  %s672_s30 = scalar_lea.sflag [#allocation6], %s1459_s0 }
 0x1bb   : > { %s1071_s23 = scalar_lea.vmem %s689_s5, 16  ;;  %p1669_p11 = scmp.ne.s32.totalorder %s1658_s7, 0 }
 0x1bc   : > { %p1072_p10 = scmp.ne.s32.totalorder %s689_s5, %s1071_s23  ;;  %s1235_s21 = smov [#allocation9]  }
 0x1bd   : > { %s1075_s28 = sshll.u32 %s1235_s21, 4  ;;  %s1076_s28 = int_to_ptr.vmem [resolvable:$false] %s1075_s28 }
 0x1be   : > { %p1073_p13 = pnand %p1072_p10, %p1669_p11  ;;  %s1077_s27 = scalar_lea.vmem %s1076_s28, 32 }
 0x1bf   : > { %p1078_p5 = scmp.lt.s32.totalorder %s689_s5, %s1076_s28  ;;  %p1079_p6 = scmp.lt.s32.totalorder %s1077_s27, %s1071_s23 }
 0x1c0   : > { %p1074_p0 = pneg %p1073_p13 }
 0x1c1   : > { %p1080_p12 = por %p1079_p6, %p1078_p5 }
 0x1c3   : > { %p1081_p2 = pnand %p1080_p12, %p1074_p0 }
 0x1c5   : > { %1084 = shalt.err (!%p1081_p2)
}
 0x1c6   : > { %s1085_s11 = scalar_lea.hbm %s1555_s24, 16  ;;  %s1089_s4 = scalar_lea.hbm %s1643_s2, 32 }
 0x1c7   : > { %p1086_p3 = scmp.ne.s32.totalorder %s1555_s24, %s1085_s11  ;;  %p1090_p8 = scmp.lt.u32.totalorder %s1555_s24, %s1643_s2 }
 0x1c8   : > { %p1091_p7 = scmp.lt.u32.totalorder %s1089_s4, %s1085_s11  ;;  %p1093_p10 = scmp.lt.u32.totalorder %s1085_s11, %s1555_s24 }
 0x1c9   : > { %p1087_p9 = pnand %p1086_p3, %p1669_p11 }
 0x1ca   : > { %p1092_p4 = por %p1091_p7, %p1090_p8 }
 0x1cb   : > { %p1088_p1 = pneg %p1087_p9 }
 0x1cc   : > { %p1094_p13 = por %p1093_p10, %p1092_p4 }
 0x1ce   : > { %p1095_p0 = pnand %p1094_p13, %p1088_p1 }
 0x1d0   : > { %1098 = shalt.err (!%p1095_p0)
}
 0x1d1   : > { %876 = dma.vmem_to_hbm [thread:$0]  (%p1669_p11), %s689_s5, 16, %s1555_s24, %s672_s30  }
 0x1d2   : > { %s1582_s28 = scalar_lea.hbm %s1644_s3, %s862_s25  ;;  %s701_s27 = sshll.u32 %s266_s29, 4  ;;  %s702_s27 = int_to_ptr.vmem [resolvable:$true] %s701_s27 }
 0x1d3   : > { %s676_s11 = scalar_lea.sflag [#allocation11], %s1459_s0  ;;  %s1099_s6 = scalar_lea.vmem %s702_s27, 16 }
 0x1d4   : > { %p1100_p5 = scmp.ne.s32.totalorder %s702_s27, %s1099_s6  ;;  %s1236_s18 = smov [#allocation10]  }
 0x1d5   : > { %s1103_s4 = sshll.u32 %s1236_s18, 4  ;;  %s1104_s4 = int_to_ptr.vmem [resolvable:$false] %s1103_s4 }
 0x1d6   : > { %p1101_p6 = pnand %p1100_p5, %p1669_p11  ;;  %s1105_s15 = scalar_lea.vmem %s1104_s4, 32 }
 0x1d7   : > { %p1106_p2 = scmp.lt.s32.totalorder %s702_s27, %s1104_s4  ;;  %p1107_p3 = scmp.lt.s32.totalorder %s1105_s15, %s1099_s6 }
 0x1d8   : > { %p1102_p12 = pneg %p1101_p6 }
 0x1d9   : > { %p1108_p9 = por %p1107_p3, %p1106_p2 }
 0x1db   : > { %p1109_p1 = pnand %p1108_p9, %p1102_p12 }
 0x1dd   : > { %1112 = shalt.err (!%p1109_p1)
}
 0x1de   : > { %s1113_s19 = scalar_lea.hbm %s1582_s28, 16  ;;  %s1117_s25 = scalar_lea.hbm %s1644_s3, 32 }
 0x1df   : > { %p1114_p8 = scmp.ne.s32.totalorder %s1582_s28, %s1113_s19  ;;  %p1118_p10 = scmp.lt.u32.totalorder %s1582_s28, %s1644_s3 }
 0x1e0   : > { %p1119_p13 = scmp.lt.u32.totalorder %s1117_s25, %s1113_s19  ;;  %p1121_p5 = scmp.lt.u32.totalorder %s1113_s19, %s1582_s28 }
 0x1e1   : > { %p1115_p7 = pnand %p1114_p8, %p1669_p11 }
 0x1e2   : > { %p1120_p0 = por %p1119_p13, %p1118_p10 }
 0x1e3   : > { %p1116_p4 = pneg %p1115_p7 }
 0x1e4   : > { %p1122_p6 = por %p1121_p5, %p1120_p0 }
 0x1e6   : > { %p1123_p12 = pnand %p1122_p6, %p1116_p4 }
 0x1e8   : > { %1126 = shalt.err (!%p1123_p12)
}
 0x1e9   : > { %877 = dma.vmem_to_hbm [thread:$0]  (%p1669_p11), %s702_s27, 16, %s1582_s28, %s676_s11  }
 0x1ea PF: > { %p895_p2 = scmp.ge.s32.totalorder %s1229_s22, 2  ;;  %s713_s30 = sand.u32 1, %s1189_s12  }
 0x1eb   : > { %p1670_p3 = scmp.ne.s32.totalorder %s1659_s10, 0  ;;  %s714_s26 = scalar_lea.sflag [#allocation6], %s713_s30 }
 0x1ed   : > { %p888_p9 = pnand %p895_p2, %p1670_p3 }
 0x1ef   : > { %1180 = dma.done.wait (!%p888_p9), %s714_s26, 16  }
 0x1f0   : > { %1182 = vsyncadd (!%p888_p9), %s714_s26, 4294967280  ;;  %s722_s23 = scalar_lea.sflag [#allocation11], %s713_s30 }
 0x1f1   : > { %1184 = dma.done.wait (!%p888_p9), %s722_s23, 16  }
 0x1f2   : > { %1186 = vsyncadd (!%p888_p9), %s722_s23, 4294967280  ;;  %s26_s22 = sadd.s32 1, %s1229_s22   ;;  %s1671_s19 = sld [smem:[#allocation16_spill]] }
 0x1f3   : > { %p23_p1 = scmp.ge.s32.totalorder %s26_s22, 6   ;;  %s1672_s7 = sld [smem:[#allocation17_spill]] }
 0x1f4   : > { %s1673_s21 = sld [smem:[#allocation18_spill]]  ;;  %s1674_s12 = smov %s1193_s13 }
 0x1f5   : > { %s1675_s13 = smov %s1197_s14  ;;  %s1676_s14 = smov %s1344_s8 }
 0x1f6   : > { %s1677_s15 = smov %s1205_s16  ;;  %s1678_s16 = smov %s1209_s17 }
 0x1f7   : > { %s1679_s17 = smov %s1347_s9  ;;  %s1680_s18 = smov %s1221_s20 }
 0x1f8   :  { %25 = sbr.rel (!%p23_p1) target bundleno = 15 (0xf), region = 111 }
 0x1f9   : > { %s1681_s20 = smov %s1672_s7 }
 0x1ff   :  { %726 = vsyncpa [#allocation5], 1 }
 0x200   :  { %728 = vsyncpa [#allocation5 + $0x1], 1 }
 0x201   :  { %729 = vsyncpa [#allocation8], 1 }
 0x202   :  { %731 = vsyncpa [#allocation8 + $0x1], 1 }
 0x203   :  { %732 = vsyncpa [#allocation6], 1 }
 0x204   :  { %734 = vsyncpa [#allocation6 + $0x1], 1 }
 0x205   :  { %735 = vsyncpa [#allocation11], 1 }
 0x206   :  { %737 = vsyncpa [#allocation11 + $0x1], 1 }

</bundles_post_ra>
